<compile_context>
chip_gen: v6e
topology: v6e:2x2x1
jax: 0.10.0
libtpu: 0.0.40
codegen_flags: <defaults>
</compile_context>

<pallas_src>
import jax
import jax.numpy as jnp
from jax.experimental import pallas as pl
from jax.experimental.pallas import tpu as pltpu


def _round_up(x, m):
    return ((x + m - 1) // m) * m


def _mlp_kernel(x_ref, w1_ref, b1_ref, w2_ref, b2_ref, w3_ref, b3_ref, o_ref):
    # layer1 + ReLU (f32 accumulation on the MXU)
    h = jnp.dot(x_ref[...], w1_ref[...], preferred_element_type=jnp.float32)
    h = jnp.maximum(h + b1_ref[...], 0.0)
    # layer2 + ReLU
    h = jnp.dot(h.astype(w2_ref.dtype), w2_ref[...],
                preferred_element_type=jnp.float32)
    h = jnp.maximum(h + b2_ref[...], 0.0)
    # layer3 (no activation) -> lane-dense (128-padded) output slab
    out = jnp.dot(h.astype(w3_ref.dtype), w3_ref[...],
                  preferred_element_type=jnp.float32)
    o_ref[...] = (out + b3_ref[...]).astype(o_ref.dtype)


def complex_nn_forward(x, params, *, block_m=512, use_bf16=False):
    """x: [B, input_size] float32; params: dict of w1,b1,w2,b2,w3,b3."""
    B, in_sz = x.shape
    w1, b1 = params["w1"], params["b1"]
    w2, b2 = params["w2"], params["b2"]
    w3, b3 = params["w3"], params["b3"]
    hid = w1.shape[1]
    out_sz = w3.shape[1]

    # ---- choose batch tile ---------------------------------------------------
    bm = max(8, min(block_m, _round_up(B, 8)))
    bm = _round_up(bm, 8)
    # v7x: prefer >= 2 grid steps along the parallel axis so both TCs get work.
    if _round_up(B, bm) // bm < 2 and B >= 16:
        bm = _round_up(pl.cdiv(B, 2), 8)
    B_pad = _round_up(B, bm)
    grid = (B_pad // bm,)

    # ---- zero-pad hidden and output dims to lane width ------------------------
    hid_pad = _round_up(hid, 128)
    out_pad = _round_up(out_sz, 128)

    if B_pad != B:
        x = jnp.pad(x, ((0, B_pad - B), (0, 0)))
    if hid_pad != hid:
        w1 = jnp.pad(w1, ((0, 0), (0, hid_pad - hid)))
        b1 = jnp.pad(b1, ((0, hid_pad - hid),))
        w2 = jnp.pad(w2, ((0, hid_pad - hid), (0, hid_pad - hid)))
        b2 = jnp.pad(b2, ((0, hid_pad - hid),))
        w3 = jnp.pad(w3, ((0, hid_pad - hid), (0, 0)))
    if out_pad != out_sz:
        w3 = jnp.pad(w3, ((0, 0), (0, out_pad - out_sz)))
        b3 = jnp.pad(b3, ((0, out_pad - out_sz),))

    # Biases kept 2-D [1, F] so they broadcast over rows inside the kernel.
    b1 = b1.reshape(1, hid_pad).astype(jnp.float32)
    b2 = b2.reshape(1, hid_pad).astype(jnp.float32)
    b3 = b3.reshape(1, out_pad).astype(jnp.float32)

    # Optional bf16 MXU operands (accumulation stays f32).
    op_dtype = jnp.bfloat16 if use_bf16 else x.dtype
    xk = x.astype(op_dtype)
    w1k = w1.astype(op_dtype)
    w2k = w2.astype(op_dtype)
    w3k = w3.astype(op_dtype)

    out_padded = pl.pallas_call(
        _mlp_kernel,
        out_shape=jax.ShapeDtypeStruct((B_pad, out_pad), jnp.float32),
        grid=grid,
        in_specs=[
            # x tiled over the batch axis; weights/biases are small -> resident.
            pl.BlockSpec((bm, in_sz), lambda i: (i, 0)),
            pl.BlockSpec((in_sz, hid_pad), lambda i: (0, 0)),
            pl.BlockSpec((1, hid_pad), lambda i: (0, 0)),
            pl.BlockSpec((hid_pad, hid_pad), lambda i: (0, 0)),
            pl.BlockSpec((1, hid_pad), lambda i: (0, 0)),
            pl.BlockSpec((hid_pad, out_pad), lambda i: (0, 0)),
            pl.BlockSpec((1, out_pad), lambda i: (0, 0)),
        ],
        out_specs=pl.BlockSpec((bm, out_pad), lambda i: (i, 0)),
        compiler_params=pltpu.CompilerParams(
            dimension_semantics=("parallel",),
        ),
    )(xk, w1k, b1, w2k, b2, w3k, b3)

    # Slice away the batch / lane padding.
    return out_padded[:B, :out_sz]


def init_params(key, input_size, output_size, hidden=64):
    """Deterministic init mimicking PyTorch Linear default U(-1/sqrt(fan_in), +)."""
    ks = jax.random.split(key, 6)

    def uinit(k, shape, fan_in):
        bound = 1.0 / jnp.sqrt(fan_in)
        return jax.random.uniform(k, shape, jnp.float32, -bound, bound)

    return {
        "w1": uinit(ks[0], (input_size, hidden), input_size),
        "b1": uinit(ks[1], (hidden,), input_size),
        "w2": uinit(ks[2], (hidden, hidden), hidden),
        "b2": uinit(ks[3], (hidden,), hidden),
        "w3": uinit(ks[4], (hidden, output_size), hidden),
        "b3": uinit(ks[5], (output_size,), hidden),
    }


if __name__ == "__main__":
    key = jax.random.PRNGKey(0)
    k_x, k_p = jax.random.split(key)

    # Small but non-trivial: ragged batch (exercises padding) and >=2 grid steps.
    batch, input_size, output_size = 20, 32, 16
    x = jax.random.normal(k_x, (batch, input_size), dtype=jnp.float32)
    params = init_params(k_p, input_size, output_size)

    out = complex_nn_forward(x, params)
    out = jax.block_until_ready(out)

    # Reference check in plain JAX (same math as the PyTorch module).
    h = jnp.maximum(x @ params["w1"] + params["b1"], 0.0)
    h = jnp.maximum(h @ params["w2"] + params["b2"], 0.0)
    ref = h @ params["w3"] + params["b3"]
    assert out.shape == (batch, output_size)
    assert jnp.allclose(out, ref, atol=1e-5, rtol=1e-5)

    print("KERNEL_OK")
</pallas_src>

<mosaic_0001>
module attributes {stable_mosaic.version = 11 : i64} {
  func.func @_mlp_kernel(%arg0: i32, %arg1: memref<16x32xf32, #tpu.memory_space<vmem>>, %arg2: memref<32x128xf32, #tpu.memory_space<vmem>>, %arg3: memref<1x128xf32, #tpu.memory_space<vmem>>, %arg4: memref<128x128xf32, #tpu.memory_space<vmem>>, %arg5: memref<1x128xf32, #tpu.memory_space<vmem>>, %arg6: memref<128x128xf32, #tpu.memory_space<vmem>>, %arg7: memref<1x128xf32, #tpu.memory_space<vmem>>, %arg8: memref<16x128xf32, #tpu.memory_space<vmem>>) attributes {dimension_semantics = [#tpu.dimension_semantics<parallel>], iteration_bounds = array<i64: 2>, scalar_prefetch = 0 : i64, scratch_operands = 0 : i64, tpu.core_type = #tpu.core_type<tc>, window_params = [{transform_indices = @transform_0, window_bounds = array<i64: 16, 32>}, {pipeline_mode = #tpu.pipeline_mode<synchronous>, transform_indices = @transform_1, window_bounds = array<i64: 32, 128>}, {pipeline_mode = #tpu.pipeline_mode<synchronous>, transform_indices = @transform_2, window_bounds = array<i64: 1, 128>}, {pipeline_mode = #tpu.pipeline_mode<synchronous>, transform_indices = @transform_3, window_bounds = array<i64: 128, 128>}, {pipeline_mode = #tpu.pipeline_mode<synchronous>, transform_indices = @transform_4, window_bounds = array<i64: 1, 128>}, {pipeline_mode = #tpu.pipeline_mode<synchronous>, transform_indices = @transform_5, window_bounds = array<i64: 128, 128>}, {pipeline_mode = #tpu.pipeline_mode<synchronous>, transform_indices = @transform_6, window_bounds = array<i64: 1, 128>}, {transform_indices = @transform_7, window_bounds = array<i64: 16, 128>}]} {
    %c0 = arith.constant 0 : index
    %c0_0 = arith.constant 0 : index
    %0 = vector.load %arg1[%c0, %c0_0] : memref<16x32xf32, #tpu.memory_space<vmem>>, vector<16x32xf32>
    %c0_1 = arith.constant 0 : index
    %c0_2 = arith.constant 0 : index
    %1 = vector.load %arg2[%c0_1, %c0_2] : memref<32x128xf32, #tpu.memory_space<vmem>>, vector<32x128xf32>
    %cst = arith.constant dense<0.000000e+00> : vector<16x128xf32>
    %2 = tpu.matmul %0, %1, %cst {dimension_numbers = #tpu.dot_dimension_numbers<[1], [0], [0], [1], [0, 0, 1, 1], [], []>} : vector<16x32xf32>, vector<32x128xf32>, vector<16x128xf32> -> vector<16x128xf32>
    %c0_3 = arith.constant 0 : index
    %c0_4 = arith.constant 0 : index
    %3 = vector.load %arg3[%c0_3, %c0_4] : memref<1x128xf32, #tpu.memory_space<vmem>>, vector<1x128xf32>
    %4 = vector.broadcast %3 : vector<1x128xf32> to vector<16x128xf32>
    %5 = arith.addf %2, %4 : vector<16x128xf32>
    %cst_5 = arith.constant 0.000000e+00 : f32
    %6 = vector.broadcast %cst_5 : f32 to vector<16x128xf32>
    %7 = arith.maximumf %5, %6 : vector<16x128xf32>
    %c0_6 = arith.constant 0 : index
    %c0_7 = arith.constant 0 : index
    %8 = vector.load %arg4[%c0_6, %c0_7] : memref<128x128xf32, #tpu.memory_space<vmem>>, vector<128x128xf32>
    %cst_8 = arith.constant dense<0.000000e+00> : vector<16x128xf32>
    %9 = tpu.matmul %7, %8, %cst_8 {dimension_numbers = #tpu.dot_dimension_numbers<[1], [0], [0], [1], [0, 0, 1, 1], [], []>} : vector<16x128xf32>, vector<128x128xf32>, vector<16x128xf32> -> vector<16x128xf32>
    %c0_9 = arith.constant 0 : index
    %c0_10 = arith.constant 0 : index
    %10 = vector.load %arg5[%c0_9, %c0_10] : memref<1x128xf32, #tpu.memory_space<vmem>>, vector<1x128xf32>
    %11 = vector.broadcast %10 : vector<1x128xf32> to vector<16x128xf32>
    %12 = arith.addf %9, %11 : vector<16x128xf32>
    %cst_11 = arith.constant 0.000000e+00 : f32
    %13 = vector.broadcast %cst_11 : f32 to vector<16x128xf32>
    %14 = arith.maximumf %12, %13 : vector<16x128xf32>
    %c0_12 = arith.constant 0 : index
    %c0_13 = arith.constant 0 : index
    %15 = vector.load %arg6[%c0_12, %c0_13] : memref<128x128xf32, #tpu.memory_space<vmem>>, vector<128x128xf32>
    %cst_14 = arith.constant dense<0.000000e+00> : vector<16x128xf32>
    %16 = tpu.matmul %14, %15, %cst_14 {dimension_numbers = #tpu.dot_dimension_numbers<[1], [0], [0], [1], [0, 0, 1, 1], [], []>} : vector<16x128xf32>, vector<128x128xf32>, vector<16x128xf32> -> vector<16x128xf32>
    %c0_15 = arith.constant 0 : index
    %c0_16 = arith.constant 0 : index
    %17 = vector.load %arg7[%c0_15, %c0_16] : memref<1x128xf32, #tpu.memory_space<vmem>>, vector<1x128xf32>
    %18 = vector.broadcast %17 : vector<1x128xf32> to vector<16x128xf32>
    %19 = arith.addf %16, %18 : vector<16x128xf32>
    %c0_17 = arith.constant 0 : index
    %c0_18 = arith.constant 0 : index
    %20 = vector.load %arg8[%c0_17, %c0_18] : memref<16x128xf32, #tpu.memory_space<vmem>>, vector<16x128xf32>
    tpu.vector_store %arg8[%c0_17, %c0_18], %19 {strides = array<i32>} : memref<16x128xf32, #tpu.memory_space<vmem>>, vector<16x128xf32>,
    return
  }
  func.func @transform_0(%arg0: i32) -> (i32, i32) {
    %c0_i32 = arith.constant 0 : i32
    %c0_i32_0 = arith.constant 0 : i32
    return %arg0, %c0_i32 : i32, i32
  }
  func.func @transform_1(%arg0: i32) -> (i32, i32) {
    %c0_i32 = arith.constant 0 : i32
    %c0_i32_0 = arith.constant 0 : i32
    %c0_i32_1 = arith.constant 0 : i32
    return %c0_i32, %c0_i32_0 : i32, i32
  }
  func.func @transform_2(%arg0: i32) -> (i32, i32) {
    %c0_i32 = arith.constant 0 : i32
    %c0_i32_0 = arith.constant 0 : i32
    %c0_i32_1 = arith.constant 0 : i32
    return %c0_i32, %c0_i32_0 : i32, i32
  }
  func.func @transform_3(%arg0: i32) -> (i32, i32) {
    %c0_i32 = arith.constant 0 : i32
    %c0_i32_0 = arith.constant 0 : i32
    %c0_i32_1 = arith.constant 0 : i32
    return %c0_i32, %c0_i32_0 : i32, i32
  }
  func.func @transform_4(%arg0: i32) -> (i32, i32) {
    %c0_i32 = arith.constant 0 : i32
    %c0_i32_0 = arith.constant 0 : i32
    %c0_i32_1 = arith.constant 0 : i32
    return %c0_i32, %c0_i32_0 : i32, i32
  }
  func.func @transform_5(%arg0: i32) -> (i32, i32) {
    %c0_i32 = arith.constant 0 : i32
    %c0_i32_0 = arith.constant 0 : i32
    %c0_i32_1 = arith.constant 0 : i32
    return %c0_i32, %c0_i32_0 : i32, i32
  }
  func.func @transform_6(%arg0: i32) -> (i32, i32) {
    %c0_i32 = arith.constant 0 : i32
    %c0_i32_0 = arith.constant 0 : i32
    %c0_i32_1 = arith.constant 0 : i32
    return %c0_i32, %c0_i32_0 : i32, i32
  }
  func.func @transform_7(%arg0: i32) -> (i32, i32) {
    %c0_i32 = arith.constant 0 : i32
    %c0_i32_0 = arith.constant 0 : i32
    return %arg0, %c0_i32 : i32, i32
  }
}

</mosaic_0001>

<bundles_post_ra>
// kernel: tpu_custom_call.1
= control target key start
LH: loop header
LB: loop body
LE: loop exit
PB: predicated region body
PF: predicated region fallthrough
CT: control target
= control target key end

     0   :  { %s1443_s0 = inlined_call_operand.hbm [shape: f32[32,32], index: 0, kind: input, shape index: {}]   ;;  %s1444_s1 = inlined_call_operand.hbm [shape: f32[32,128], index: 1, kind: input, shape index: {}]   ;;  %s1445_s2 = inlined_call_operand.vmem [shape: f32[1,128], index: 2, kind: input, shape index: {}]   ;;  %s1446_s3 = inlined_call_operand.hbm [shape: f32[128,128], index: 3, kind: input, shape index: {}]   ;;  %s1447_s4 = inlined_call_operand.vmem [shape: f32[1,128], index: 4, kind: input, shape index: {}]   ;;  %s1448_s5 = inlined_call_operand.hbm [shape: f32[128,128], index: 5, kind: input, shape index: {}]   ;;  %s1449_s6 = inlined_call_operand.vmem [shape: f32[1,128], index: 6, kind: input, shape index: {}]   ;;  %s1450_s7 = inlined_call_operand.hbm [shape: f32[32,128], index: 7, kind: output, shape index: {}]  }
   0x1   :  { %1457 = sst [smem:[#allocation15_spill]] %s1444_s1 }
   0x2   :  { %12 = vsyncpa [#allocation3], 0 }
   0x3   :  { %14 = vsyncpa [#allocation3 + $0x1], 0 }
   0x4   :  { %15 = vsyncpa [#allocation6], 0 }
   0x5   :  { %16 = vsyncpa [#allocation9], 0 }
   0x6   :  { %17 = vsyncpa [#allocation4], 0 }
   0x7   :  { %19 = vsyncpa [#allocation4 + $0x1], 0  ;;  %s1216_s24 = smov 0   ;;  %s1218_s25 = smov 0  }
   0x8   :  { %s1220_s26 = smov 0   ;;  %s1222_s27 = smov 0  }
   0x9 LB: > { %s1237_s28 = sadd.s32 4294967295, %s1165_s27   ;;  %s756_s29 = sadd.s32 4294967294, %s1165_s27   ;;  %s1165_s27 = sphi %s1222_s27, %s1479_s27   ;;  %s1161_s26 = sphi %s1220_s26, %s1478_s26   ;;  %s1157_s25 = sphi %s1218_s25, %s1477_s25   ;;  %s1153_s24 = sphi %s1216_s24, %s1476_s24  }
   0xa   : > { %p45_p0 = scmp.ne.s32.totalorder %s1157_s25, %s1153_s24  ;;  %p1451_p1 = scmp.eq.s32.totalorder %s1237_s28, 0 }
   0xb   : > { %p195_p2 = scmp.eq.s32.totalorder %s1237_s28, 1  ;;  %p201_p3 = scmp.eq.s32.totalorder %s756_s29, 1 }
   0xc   : > { %p1246_p4 = por %p1451_p1, %p45_p0  ;;  %p757_p5 = scmp.ge.s32.totalorder %s1165_s27, 1 }
   0xd   : > { %p1251_p6 = por %p201_p3, %p45_p0  ;;  %p208_p7 = scmp.lt.s32.totalorder %s1165_s27, 3 }
   0xe   : > { %s1458_s30 = scalar_select %p1246_p4, 1, 0 }
   0xf   : > { %s1459_s8 = scalar_select %p1251_p6, 1, 0 }
  0x10   : > { %p1256_p8 = pnand %p757_p5, %p208_p7  ;;  %s1167_s10 = smov [#allocation5]  }
  0x11   : > { %s220_s11 = sshll.u32 %s1167_s10, 4  ;;  %s1168_s13 = smov [#allocation7]   ;;  %s221_s11 = int_to_ptr.vmem [resolvable:$true] %s220_s11 }
  0x12   : > { %s1460_s9 = scalar_select %p1256_p8, 1, 0 }
  0x13   : > { %p922_p9 = pneg %p1256_p8  ;;  %s236_s14 = sshll.u32 %s1168_s13, 4  ;;  %s237_s14 = int_to_ptr.vmem [resolvable:$true] %s236_s14 }
  0x14   : > { %s1169_s15 = smov [#allocation8]   ;;  %s998_s17 = scalar_lea.vmem %s221_s11, 512 }
  0x15   : > { %p1265_p11 = pnand %p922_p9, %p1451_p1  ;;  %s252_s16 = sshll.u32 %s1169_s15, 4  ;;  %s253_s16 = int_to_ptr.vmem [resolvable:$true] %s252_s16 }
  0x16   : > { %p999_p13 = scmp.ne.s32.totalorder %s221_s11, %s998_s17  ;;  %p1006_p5 = scmp.lt.s32.totalorder %s221_s11, %s221_s11 }
  0x17   : > { %p989_p12 = pneg %p1265_p11  ;;  %p1007_p7 = scmp.lt.s32.totalorder %s998_s17, %s998_s17 }
  0x19   : > { %p1001_p0 = pnand %p999_p13, %p989_p12  ;;  %p1008_p9 = por %p1007_p7, %p1006_p5 }
  0x1b   : > { %p1002_p3 = pneg %p1001_p0 }
  0x1d   : > { %p1009_p10 = pnand %p1008_p9, %p1002_p3 }
  0x1f   : > { %1012 = shalt.err (!%p1009_p10)
}
  0x20   : > { %s1452_s18 = smov 128   ;;  %s1453_s19 = smov 8  }
  0x21   : > { %s1462_s1 = sld [smem:[#allocation15_spill]]  ;;  %s1024_s22 = scalar_lea.vmem %s237_s14, 2048 }
  0x22   : > { %p1025_p13 = scmp.ne.s32.totalorder %s237_s14, %s1024_s22  ;;  %p1032_p3 = scmp.lt.s32.totalorder %s237_s14, %s237_s14 }
  0x23   : > { %p1033_p10 = scmp.lt.s32.totalorder %s1024_s22, %s1024_s22 }
  0x24   : > { %p1027_p0 = pnand %p1025_p13, %p989_p12 }
  0x25   : > { %p1034_p7 = por %p1033_p10, %p1032_p3 }
  0x26   : > { %p1028_p5 = pneg %p1027_p0 }
  0x27   : > { %925 = dma.hbm_to_vmem [thread:$0]  (!%p1265_p11), %s1462_s1, 512, %s221_s11, [#allocation6], %s1452_s18, %s1452_s18, %s1453_s19  }
  0x28   : > { %p1035_p9 = pnand %p1034_p7, %p1028_p5 }
  0x2a   : > { %1038 = shalt.err (!%p1035_p9)
}
  0x2b   : > { %928 = dma.hbm_to_vmem [thread:$0]  (!%p1265_p11), %s1446_s3, 2048, %s237_s14, [#allocation6], %s1452_s18, %s1452_s18, %s1453_s19  }
  0x2c   : > { %s1050_s10 = scalar_lea.vmem %s253_s16, 2048  ;;  %p1058_p3 = scmp.lt.s32.totalorder %s253_s16, %s253_s16 }
  0x2d   : > { %p1051_p1 = scmp.ne.s32.totalorder %s253_s16, %s1050_s10  ;;  %p1059_p5 = scmp.lt.s32.totalorder %s1050_s10, %s1050_s10 }
  0x2f   : > { %p1053_p13 = pnand %p1051_p1, %p989_p12  ;;  %p1060_p10 = por %p1059_p5, %p1058_p3 }
  0x31   : > { %p1054_p0 = pneg %p1053_p13 }
  0x33   : > { %p1061_p7 = pnand %p1060_p10, %p1054_p0 }
  0x35   : > { %1064 = shalt.err (!%p1061_p7)
}
  0x36   : > { %931 = dma.hbm_to_vmem [thread:$0]  (!%p1265_p11), %s1448_s5, 2048, %s253_s16, [#allocation9], %s1452_s18, %s1452_s18, %s1453_s19  }
  0x37   : > { %s1305_s14 = sadd.s32 1, %s1165_s27   ;;  %s32_s15 = sadd.s32 1, %s1161_s26 }
  0x38   : > { %s29_s12 = ssub.s32 %s1165_s27, %s1305_s14  ;;  %p39_p12 = scmp.ne.s32.totalorder %s1161_s26, %s1157_s25 }
  0x39   : > { %p30_p1 = scmp.eq.s32.totalorder %s29_s12, 0  ;;  %p40_p9 = scmp.eq.s32.totalorder %s1165_s27, 0 }
  0x3a   : > { %p943_p13 = scmp.lt.s32.totalorder %s1165_s27, 2  ;;  %p1319_p3 = por %p195_p2, %p39_p12 }
  0x3b   : > { %s1315_s17 = scalar_select %p30_p1, %s1161_s26, %s32_s15  }
  0x3c   : > { %p41_p0 = por %p40_p9, %p39_p12  ;;  %s269_s21 = sand.u32 1, %s1161_s26  }
  0x3d   : > { %s1463_s20 = scalar_select %p1319_p3, 1, 0 }
  0x3e   : > { %s781_s22 = sshll.u32 %s1165_s27, 8  ;;  %s762_s16 = sshll.u32 %s269_s21, 4 }
  0x3f   : > { %s1328_s10 = scalar_lea.hbm %s1443_s0, %s781_s22  ;;  %s273_s11 = scalar_lea.vmem [#allocation2], %s762_s16 }
  0x40   : > { %s280_s13 = sshll.u32 %s273_s11, 4  ;;  %p1330_p11 = pnand %p943_p13, %p41_p0  ;;  %s1334_s13 = int_to_ptr.vmem [resolvable:$true] %s280_s13 }
  0x41   : > { %s1336_s15 = scalar_lea.sflag [#allocation3], %s269_s21  ;;  %s1065_s18 = scalar_lea.hbm %s1328_s10, 256 }
  0x42   : > { %p1066_p2 = scmp.ne.s32.totalorder %s1328_s10, %s1065_s18  ;;  %p1067_p5 = pneg %p1330_p11 }
  0x43   : > { %s1070_s16 = scalar_lea.hbm %s1443_s0, 512  ;;  %p1071_p1 = scmp.lt.s32.totalorder %s1328_s10, %s1443_s0 }
  0x44   : > { %p1068_p10 = pnand %p1067_p5, %p1066_p2  ;;  %p1072_p12 = scmp.lt.s32.totalorder %s1070_s16, %s1065_s18 }
  0x46   : > { %p1069_p7 = pneg %p1068_p10  ;;  %p1073_p9 = por %p1072_p12, %p1071_p1 }
  0x48   : > { %p1074_p13 = pnand %p1073_p9, %p1069_p7 }
  0x4a   : > { %1077 = shalt.err (!%p1074_p13)
}
  0x4b   : > { %s1078_s21 = scalar_lea.vmem %s1334_s13, 256  ;;  %s1172_s19 = smov [#allocation2]  }
  0x4c   : > { %p1079_p0 = scmp.ne.s32.totalorder %s1334_s13, %s1078_s21  ;;  %s1083_s1 = sshll.u32 %s1172_s19, 4  ;;  %s1084_s1 = int_to_ptr.vmem [resolvable:$false] %s1083_s1 }
  0x4d   : > { %s1085_s22 = scalar_lea.vmem %s1084_s1, 512  ;;  %p1086_p10 = scmp.lt.s32.totalorder %s1334_s13, %s1084_s1 }
  0x4e   : > { %p1081_p6 = pnand %p1079_p0, %p1067_p5  ;;  %p1087_p3 = scmp.lt.s32.totalorder %s1085_s22, %s1078_s21 }
  0x50   : > { %p1082_p2 = pneg %p1081_p6  ;;  %p1088_p4 = por %p1087_p3, %p1086_p10 }
  0x52   : > { %p1089_p8 = pnand %p1088_p4, %p1082_p2 }
  0x54   : > { %1092 = shalt.err (!%p1089_p8)
}
  0x55   : > { %s1465_s18 = smov 8   ;;  %s1466_s23 = smov 128  }
  0x56   : > { %935 = dma.hbm_to_vmem [thread:$0]  (!%p1330_p11), %s1328_s10, 256, %s1334_s13, %s1336_s15, %s1466_s23, %s1466_s23, %s1465_s18  }
  0x57   : > { %p1467_p6 = scmp.ne.s32.totalorder %s1460_s9, 0 }
  0x58   : > { %s1363_s19 = sand.u32 (!%p1467_p6), 1, %s1157_s25   ;;  %p1468_p4 = scmp.ne.s32.totalorder (!%p1467_p6), %s1458_s30, 0 }
  0x59   : > { %292 = sbr.rel (%p1467_p6) target bundleno = 722 (0x2d2), region = 48  ;;  %s766_s1 = sshll.u32 (!%p1467_p6), %s1363_s19, 4 }
  0x5a   : > { %s295_s16 = scalar_lea.sflag (!%p1467_p6), [#allocation3], %s1363_s19  ;;  %s298_s12 = scalar_lea.vmem (!%p1467_p6), [#allocation2], %s766_s1 }
  0x5e   : > { %1136 = dma.done.wait (%p1468_p4), %s295_s16, 256  }
  0x5f   : > { %1138 = vsyncadd (%p1468_p4), %s295_s16, 4294967040  ;;  %p1469_p8 = scmp.eq.s32.totalorder %s1237_s28, 0 }
  0x61   : > { %1140 = dma.done.wait (%p1469_p8), [#allocation6], 2560   ;;  %p1470_p3 = pmov %p1469_p8 }
  0x63   : > { %1142 = vsyncadd (%p1470_p3), [#allocation6], 4294964736  ;;  %p1471_p11 = pmov %p1470_p3 }
  0x64   : > { %p1472_p5 = pmov %p1470_p3 }
  0x65   : > { %1144 = dma.done.wait (%p1471_p11), [#allocation9], 2048  }
  0x66   : > { %1146 = vsyncadd (%p1472_p5), [#allocation9], 4294965248  ;;  %vm356_vm0 = vcmask 261120   ;;  %v348_v0 = vld [vmem:[#allocation5 + $0x18] sm:$0xff]  ;;  %v347_v1 = vld [vmem:[#allocation5 + $0x10] sm:$0xff]  ;;  %s340_s11 = scalar_lea.vmem [#allocation10], %s766_s1 }
  0x67   : > { %825 = vmatprep.subr.mxu0 %v348_v0  ;;  %v343_v2 = vld [vmem:[%s298_s12] sm:$0xff]  ;;  %v346_v3 = vld [vmem:[#allocation5 + $0x8] sm:$0xff]  ;;  %v455_v4 = vld [vmem:[#allocation7 + $0x78] sm:$0xff]  ;;  %s654_s21 = sshll.u32 %s340_s11, 4  ;;  %s782_s22 = sshll.u32 %s1237_s28, 8  ;;  %s1395_s21 = int_to_ptr.vmem [resolvable:$true] %s654_s21 }
  0x68   : > { %826 = vmatpush3.msra.mxu0 %v348_v0  ;;  %833 = vmatprep.mubr.msk.f32.mxu0 %vm356_vm0, %v343_v2  ;;  %v454_v5 = vld [vmem:[#allocation7 + $0x70] sm:$0xff]  ;;  %v345_v6 = vld [vmem:[#allocation5] sm:$0xff]  ;;  %v453_v7 = vld [vmem:[#allocation7 + $0x68] sm:$0xff]  ;;  %s1400_s16 = scalar_lea.hbm %s1450_s7, %s782_s22  ;;  %s1093_s1 = scalar_lea.vmem %s1395_s21, 256 }
  0x69   : > { %827 = vmatprep.subr.mxu0 %v347_v1  ;;  %836 = vmatprep.subr.mxu1 %v455_v4  ;;  %v344_v8 = vld [vmem:[%s298_s12 + $0x8] sm:$0xff]  ;;  %v452_v9 = vld [vmem:[#allocation7 + $0x60] sm:$0xff]  ;;  %v450_v11 = vld [vmem:[#allocation7 + $0x50] sm:$0xff]  ;;  %s641_s12 = scalar_lea.sflag [#allocation4], %s1363_s19  ;;  %p1094_p7 = scmp.ne.s32.totalorder %s1395_s21, %s1093_s1 }
  0x6a   : > { %828 = vmatpush3.msra.mxu0 %v347_v1  ;;  %837 = vmatpush3.msra.mxu1 %v455_v4  ;;  %v451_v10 = vld [vmem:[#allocation7 + $0x58] sm:$0xff]  ;;  %v449_v12 = vld [vmem:[#allocation7 + $0x48] sm:$0xff]  ;;  %v448_v13 = vld [vmem:[#allocation7 + $0x40] sm:$0xff]  ;;  %p1473_p1 = scmp.ne.s32.totalorder %s1463_s20, 0  ;;  %s1173_s28 = smov [#allocation10]  }
  0x6b   : > { %829 = vmatprep.subr.mxu0 %v346_v3  ;;  %838 = vmatprep.subr.mxu1 %v454_v5  ;;  %v447_v14 = vld [vmem:[#allocation7 + $0x38] sm:$0xff]  ;;  %v446_v15 = vld [vmem:[#allocation7 + $0x30] sm:$0xff]  ;;  %v445_v16 = vld [vmem:[#allocation7 + $0x28] sm:$0xff]  ;;  %s1097_s30 = sshll.u32 %s1173_s28, 4  ;;  %s1098_s30 = int_to_ptr.vmem [resolvable:$false] %s1097_s30 }
  0x6c   : > { %830 = vmatpush3.msra.mxu0 %v346_v3  ;;  %839 = vmatpush3.msra.mxu1 %v454_v5  ;;  %v444_v17 = vld [vmem:[#allocation7 + $0x20] sm:$0xff]  ;;  %v443_v18 = vld [vmem:[#allocation7 + $0x18] sm:$0xff]  ;;  %v442_v19 = vld [vmem:[#allocation7 + $0x10] sm:$0xff]  ;;  %p1095_p12 = pnand %p1094_p7, %p1473_p1  ;;  %s1099_s9 = scalar_lea.vmem %s1098_s30, 512 }
  0x6d   : > { %831 = vmatprep.subr.mxu0 %v345_v6  ;;  %840 = vmatprep.subr.mxu1 %v453_v7  ;;  %v441_v20 = vld [vmem:[#allocation7 + $0x8] sm:$0xff]  ;;  %v440_v21 = vld [vmem:[#allocation7] sm:$0xff]  ;;  %v555_v22 = vld [vmem:[#allocation8 + $0x78] sm:$0xff]  ;;  %p1100_p13 = scmp.lt.s32.totalorder %s1395_s21, %s1098_s30  ;;  %p1101_p0 = scmp.lt.s32.totalorder %s1099_s9, %s1093_s1 }
  0x6e   : > { %832 = vmatpush3.msra.mxu0 %v345_v6  ;;  %841 = vmatpush3.msra.mxu1 %v453_v7  ;;  %v554_v23 = vld [vmem:[#allocation8 + $0x70] sm:$0xff]  ;;  %v553_v24 = vld [vmem:[#allocation8 + $0x68] sm:$0xff]  ;;  %v552_v25 = vld [vmem:[#allocation8 + $0x60] sm:$0xff]  ;;  %p1096_p9 = pneg %p1095_p12 }
  0x6f   : > { %834 = vmatmul.mubr.msk.f32.vlgmr.msra.gmra.mxu0 %vm356_vm0, %v344_v8  ;;  %842 = vmatprep.subr.mxu1 %v452_v9  ;;  %v551_v26 = vld [vmem:[#allocation8 + $0x58] sm:$0xff]  ;;  %v550_v27 = vld [vmem:[#allocation8 + $0x50] sm:$0xff]  ;;  %v549_v28 = vld [vmem:[#allocation8 + $0x48] sm:$0xff]  ;;  %p1102_p2 = por %p1101_p0, %p1100_p13 }
  0x70   : > { %843 = vmatpush3.msra.mxu1 %v452_v9  ;;  %871 = vmatprep.subr.mxu0 %v555_v22  ;;  %v548_v29 = vld [vmem:[#allocation8 + $0x40] sm:$0xff]  ;;  %v547_v30 = vld [vmem:[#allocation8 + $0x38] sm:$0xff]  ;;  %v546_v31 = vld [vmem:[#allocation8 + $0x30] sm:$0xff] }
  0x71   : > { %844 = vmatprep.subr.mxu1 %v451_v10  ;;  %872 = vmatpush3.msra.mxu0 %v555_v22  ;;  %v545_v32 = vld [vmem:[#allocation8 + $0x28] sm:$0xff]  ;;  %v544_v33 = vld [vmem:[#allocation8 + $0x20] sm:$0xff]  ;;  %v543_v41 = vld [vmem:[#allocation8 + $0x18] sm:$0xff]  ;;  %p1103_p10 = pnand %p1102_p2, %p1096_p9 }
  0x72   : > { %845 = vmatpush3.msra.mxu1 %v451_v10  ;;  %873 = vmatprep.subr.mxu0 %v554_v23  ;;  %v771_v34 = vld [vmem:[%s1445_s2] ss:$0 sm:$0xff]  ;;  %v542_v42 = vld [vmem:[#allocation8 + $0x10] sm:$0xff]  ;;  %v541_v43 = vld [vmem:[#allocation8 + $0x8] sm:$0xff] }
  0x73   : > { %846 = vmatprep.subr.mxu1 %v450_v11  ;;  %874 = vmatpush3.msra.mxu0 %v554_v23  ;;  %v540_v44 = vld [vmem:[#allocation8] sm:$0xff] }
  0x74   : > { %847 = vmatpush3.msra.mxu1 %v450_v11  ;;  %875 = vmatprep.subr.mxu0 %v553_v24  ;;  %v774_v45 = vld [vmem:[%s1447_s4] ss:$0 sm:$0xff] }
  0x75   : > { %848 = vmatprep.subr.mxu1 %v449_v12  ;;  %876 = vmatpush3.msra.mxu0 %v553_v24  ;;  %v775_v52 = vld [vmem:[%s1449_s6] ss:$0 sm:$0xff] }
  0x76   : > { %849 = vmatpush3.msra.mxu1 %v449_v12  ;;  %877 = vmatprep.subr.mxu0 %v552_v25 }
  0x77   : > { %850 = vmatprep.subr.mxu1 %v448_v13  ;;  %878 = vmatpush3.msra.mxu0 %v552_v25 }
  0x78   : > { %851 = vmatpush3.msra.mxu1 %v448_v13  ;;  %879 = vmatprep.subr.mxu0 %v551_v26 }
  0x79   : > { %852 = vmatprep.subr.mxu1 %v447_v14  ;;  %880 = vmatpush3.msra.mxu0 %v551_v26 }
  0x7a   : > { %853 = vmatpush3.msra.mxu1 %v447_v14  ;;  %881 = vmatprep.subr.mxu0 %v550_v27 }
  0x7b   : > { %854 = vmatprep.subr.mxu1 %v446_v15  ;;  %882 = vmatpush3.msra.mxu0 %v550_v27 }
  0x7c   : > { %855 = vmatpush3.msra.mxu1 %v446_v15  ;;  %883 = vmatprep.subr.mxu0 %v549_v28 }
  0x7d   : > { %856 = vmatprep.subr.mxu1 %v445_v16  ;;  %884 = vmatpush3.msra.mxu0 %v549_v28 }
  0x7e   : > { %857 = vmatpush3.msra.mxu1 %v445_v16  ;;  %885 = vmatprep.subr.mxu0 %v548_v29 }
  0x7f   : > { %858 = vmatprep.subr.mxu1 %v444_v17  ;;  %886 = vmatpush3.msra.mxu0 %v548_v29 }
  0x80   : > { %859 = vmatpush3.msra.mxu1 %v444_v17  ;;  %887 = vmatprep.subr.mxu0 %v547_v30 }
  0x81   : > { %860 = vmatprep.subr.mxu1 %v443_v18  ;;  %888 = vmatpush3.msra.mxu0 %v547_v30 }
  0x82   : > { %861 = vmatpush3.msra.mxu1 %v443_v18  ;;  %889 = vmatprep.subr.mxu0 %v546_v31 }
  0x83   : > { %862 = vmatprep.subr.mxu1 %v442_v19  ;;  %890 = vmatpush3.msra.mxu0 %v546_v31 }
  0x84   : > { %863 = vmatpush3.msra.mxu1 %v442_v19  ;;  %891 = vmatprep.subr.mxu0 %v545_v32 }
  0x85   : > { %864 = vmatprep.subr.mxu1 %v441_v20  ;;  %892 = vmatpush3.msra.mxu0 %v545_v32 }
  0x86   : > { %865 = vmatpush3.msra.mxu1 %v441_v20  ;;  %893 = vmatprep.subr.mxu0 %v544_v33 }
  0x87   : > { %866 = vmatprep.subr.mxu1 %v440_v21  ;;  %894 = vmatpush3.msra.mxu0 %v544_v33 }
  0x88   : > { %867 = vmatpush3.msra.mxu1 %v440_v21  ;;  %895 = vmatprep.subr.mxu0 %v543_v41 }
  0x89   : > { %896 = vmatpush3.msra.mxu0 %v543_v41 }
  0x8a   : > { %897 = vmatprep.subr.mxu0 %v542_v42 }
  0x8b   : > { %898 = vmatpush3.msra.mxu0 %v542_v42 }
  0x8c   : > { %899 = vmatprep.subr.mxu0 %v541_v43 }
  0x8d   : > { %900 = vmatpush3.msra.mxu0 %v541_v43 }
  0x8e   : > { %901 = vmatprep.subr.mxu0 %v540_v44 }
  0x8f   : > { %902 = vmatpush3.msra.mxu0 %v540_v44 }
 0x12f   : > { %v835_v35 = vpop.f32.mrf.mxu0 }
 0x130   : > { %v435_v36 = vadd.f32 %v835_v35, %v771_v34 }
 0x131   : > { %v429_v37 = vpop.f32.mrf.mxu0 }
 0x132   : > { %v430_v38 = vadd.f32 %v771_v34, %v429_v37  ;;  %v439_v40 = vmax.f32 %v435_v36, 0.0 }
 0x134   : > { %v438_v39 = vmax.f32 %v430_v38, 0.0 }
 0x136   : > { %868 = vmatprep.mubr.f32.mxu1 %v438_v39 }
 0x137   : > { %869 = vmatmul.mubr.f32.vlgmr.msra.gmra.mxu1 %v439_v40 }
 0x1f7   : > { %v870_v46 = vpop.f32.mrf.mxu1 }
 0x1f8   : > { %v535_v47 = vadd.f32 %v870_v46, %v774_v45 }
 0x1f9   : > { %v529_v48 = vpop.f32.mrf.mxu1 }
 0x1fa   : > { %v530_v49 = vadd.f32 %v774_v45, %v529_v48  ;;  %v539_v51 = vmax.f32 %v535_v47, 0.0 }
 0x1fc   : > { %v538_v50 = vmax.f32 %v530_v49, 0.0 }
 0x1fe   : > { %903 = vmatprep.mubr.f32.mxu0 %v538_v50 }
 0x1ff   : > { %904 = vmatmul.mubr.f32.vlgmr.msra.gmra.mxu0 %v539_v51 }
 0x2bf   : > { %v905_v53 = vpop.f32.mrf.mxu0 }
 0x2c0   : > { %v635_v54 = vadd.f32 %v905_v53, %v775_v52 }
 0x2c1   : > { %v629_v55 = vpop.f32.mrf.mxu0 }
 0x2c2   : > { %639 = vst [vmem:[%s340_s11 + $0x8] sm:$0xff] %v635_v54  ;;  %v630_v56 = vadd.f32 %v775_v52, %v629_v55 }
 0x2c4   : > { %638 = vst [vmem:[%s340_s11] sm:$0xff] %v630_v56 }
 0x2c5   : > { %1106 = shalt.err (!%p1103_p10)
}
 0x2c6   : > { %s1107_s10 = scalar_lea.hbm %s1400_s16, 256  ;;  %s1111_s29 = scalar_lea.hbm %s1450_s7, 512 }
 0x2c7   : > { %p1108_p6 = scmp.ne.s32.totalorder %s1400_s16, %s1107_s10  ;;  %p1112_p3 = scmp.lt.s32.totalorder %s1400_s16, %s1450_s7 }
 0x2c8   : > { %p1113_p11 = scmp.lt.s32.totalorder %s1111_s29, %s1107_s10 }
 0x2c9   : > { %p1109_p4 = pnand %p1108_p6, %p1473_p1 }
 0x2ca   : > { %p1114_p5 = por %p1113_p11, %p1112_p3 }
 0x2cb   : > { %p1110_p8 = pneg %p1109_p4 }
 0x2cd   : > { %p1115_p7 = pnand %p1114_p5, %p1110_p8 }
 0x2cf   : > { %1118 = shalt.err (!%p1115_p7)
}
 0x2d0   : > { %s1174_s18 = smov 128   ;;  %s1175_s23 = smov 8  }
 0x2d1   : > { %920 = dma.vmem_to_hbm [thread:$0]  (%p1473_p1), %s1395_s21, 256, %s1400_s16, %s641_s12, %s1174_s18, %s1174_s18, %s1175_s23  }
 0x2d2 PF: > { %s669_s1 = sand.u32 1, %s1153_s24   ;;  %p1474_p12 = scmp.ne.s32.totalorder %s1459_s8, 0 }
 0x2d3   : > { %p1475_p9 = scmp.ge.s32.totalorder %s1165_s27, 2  ;;  %s670_s28 = scalar_lea.sflag [#allocation4], %s669_s1 }
 0x2d5   : > { %p937_p13 = pnand %p1475_p9, %p1474_p12 }
 0x2d7   : > { %p938_p0 = pneg %p937_p13 }
 0x2d9   : > { %1148 = dma.done.wait (%p938_p0), %s670_s28, 256  }
 0x2da   : > { %1150 = vsyncadd (%p938_p0), %s670_s28, 4294967040  ;;  %p22_p2 = scmp.ge.s32.totalorder %s1305_s14, 4   ;;  %s1476_s24 = smov %s1157_s25 }
 0x2db   : > { %s1477_s25 = smov %s1161_s26  ;;  %s1478_s26 = smov %s1315_s17 }
 0x2dc   : > { %s1479_s27 = smov %s1305_s14  ;;  %24 = sbr.rel (!%p22_p2) target bundleno = 9 (0x9), region = 105 }
 0x2e1   :  { %675 = vsyncpa [#allocation3], 1 }
 0x2e2   :  { %677 = vsyncpa [#allocation3 + $0x1], 1 }
 0x2e3   :  { %678 = vsyncpa [#allocation6], 1 }
 0x2e4   :  { %679 = vsyncpa [#allocation9], 1 }
 0x2e5   :  { %680 = vsyncpa [#allocation4], 1 }
 0x2e6   :  { %682 = vsyncpa [#allocation4 + $0x1], 1 }

</bundles_post_ra>
